<compile_context>
chip_gen: v7x
topology: tpu7x:2x2x1
jax: 0.10.0
libtpu: 0.0.40
codegen_flags: <defaults>
</compile_context>

<pallas_src>
import jax
import jax.numpy as jnp
from jax.experimental import pallas as pl
from jax.experimental.pallas import tpu as pltpu


_LANE = 128                       # vreg lane width
_DEFAULT_TARGET_BYTES = 3 << 20   # ~3 MiB of (x + out) bytes per grid step
_VMEM_LIMIT_BYTES = 32 << 20      # safe on v5e/v6e (128 MiB phys) and v7x (64 MiB)


def _sublane_align(*dtypes):
    """Dtype-aware row alignment: 8 for 32-bit, 16 for bf16, 32 for int8."""
    align = 8
    for d in dtypes:
        item = jnp.dtype(d).itemsize
        align = max(align, 8 * max(1, 4 // item))
    return align


# ---------------------------------------------------------------------------
# Generic row-scale kernel:  out[r, d] = x[r, d] * srow[0, d]
# x block (B_R, T_D), scale block (1, T_D) in f32 (lane-aligned, VPU broadcast
# along sublanes only).
# ---------------------------------------------------------------------------
def _row_scale_kernel(s_ref, x_ref, o_ref):
    x = x_ref[...]                       # (B_R, T_D)
    s = s_ref[...]                       # (1, T_D) float32
    o_ref[...] = (x.astype(jnp.float32) * s).astype(o_ref.dtype)


def _row_scale(x2, srow, *, target_bytes=_DEFAULT_TARGET_BYTES):
    """x2: (R, D), srow: (1, D) float32.  Returns (R, D) in promoted dtype."""
    R, D = x2.shape
    out_dtype = jnp.promote_types(x2.dtype, srow.dtype)
    x_item = jnp.dtype(x2.dtype).itemsize
    o_item = jnp.dtype(out_dtype).itemsize
    s_item = jnp.dtype(srow.dtype).itemsize
    sub = _sublane_align(x2.dtype, out_dtype)

    row_bytes = D * (x_item + o_item)          # x + out bytes for one full row
    min_rows = R if R <= sub else sub          # smallest legal row-block

    # Prefer full-width (fully contiguous) row blocks; grow over rows to hit
    # the byte budget.  Only split the row dimension when even `min_rows` full
    # rows (+ the scale tile) exceed the budget.
    if (min_rows * row_bytes + D * s_item <= target_bytes) or D <= _LANE:
        T_D = D
        max_rows = max(min_rows, target_bytes // max(row_bytes, 1))
        if max_rows >= R:
            B_R = R
        else:
            B_R = max(sub, (max_rows // sub) * sub)
    else:
        B_R = min_rows
        per_col = B_R * (x_item + o_item) + s_item
        T_D = min(D, max(_LANE, (target_bytes // per_col) // _LANE * _LANE))

    grid = (pl.cdiv(R, B_R), pl.cdiv(D, T_D))

    cost = pl.CostEstimate(
        flops=R * D,
        transcendentals=0,
        bytes_accessed=R * D * (x_item + o_item) + D * s_item,
    )

    return pl.pallas_call(
        _row_scale_kernel,
        out_shape=jax.ShapeDtypeStruct((R, D), out_dtype),
        grid_spec=pltpu.PrefetchScalarGridSpec(
            num_scalar_prefetch=0,
            grid=grid,
            in_specs=[
                pl.BlockSpec((1, T_D), lambda i, j: (0, j)),      # scale row
                pl.BlockSpec((B_R, T_D), lambda i, j: (i, j)),    # x
            ],
            out_specs=pl.BlockSpec((B_R, T_D), lambda i, j: (i, j)),
        ),
        compiler_params=pltpu.CompilerParams(
            dimension_semantics=("parallel", "parallel"),
            vmem_limit_bytes=_VMEM_LIMIT_BYTES),
        cost_estimate=cost,
    )(srow, x2)


# ---------------------------------------------------------------------------
# dim == 4 : out[n, c, h, w] = x[n, c, h, w] * scale[c]
# ---------------------------------------------------------------------------
def scale_layer_dim4(x_nchw, scale, *, target_bytes=_DEFAULT_TARGET_BYTES):
    N, C, H, W = x_nchw.shape
    HW = H * W
    D = C * HW
    x2 = x_nchw.reshape(N, D)
    # Pre-expand scale once: per-channel value repeated across its HW span.
    srow = jnp.repeat(scale.astype(jnp.float32), HW).reshape(1, D)
    out2 = _row_scale(x2, srow, target_bytes=target_bytes)
    return out2.reshape(N, C, H, W)


# ---------------------------------------------------------------------------
# dim == 2 : out[n, c] = x[n, c] * scale[c]
# ---------------------------------------------------------------------------
def scale_layer_dim2(x_nc, scale, *, target_bytes=_DEFAULT_TARGET_BYTES):
    N, C = x_nc.shape
    srow = scale.astype(jnp.float32).reshape(1, C)

    # Lane-dense repack: fold k rows into one 128-wide row when possible.
    k = 1
    if C < _LANE and _LANE % C == 0:
        k = _LANE // C
        if N % k != 0:
            k = 1

    if k > 1:
        x2 = x_nc.reshape(N // k, k * C)
        srow_k = jnp.tile(srow, (1, k))
        out2 = _row_scale(x2, srow_k, target_bytes=target_bytes)
        return out2.reshape(N, C)

    return _row_scale(x_nc, srow, target_bytes=target_bytes)


class ScaleLayer:
    """JAX/Pallas equivalent of the PyTorch ScaleLayer module."""

    def __init__(self, size, init_value=1.0, dim=4):
        # Deterministic parameter init, matching torch: init_value * ones(size)
        self.scale = jnp.full((size,), init_value, dtype=jnp.float32)
        self.dim = dim

    def __call__(self, x):
        if self.dim == 4:
            return scale_layer_dim4(x, self.scale)
        elif self.dim == 2:
            return scale_layer_dim2(x, self.scale)
        raise ValueError(f"ScaleLayer: unsupported dim={self.dim} (expected 2 or 4)")


if __name__ == "__main__":
    key = jax.random.PRNGKey(0)
    k1, k2, k3, k4 = jax.random.split(key, 4)

    # --- dim=4: NCHW input, per-channel scale -------------------------------
    N, C, H, W = 2, 4, 16, 16
    x4 = jax.random.normal(k1, (N, C, H, W), dtype=jnp.float32)
    layer4 = ScaleLayer(size=C, init_value=0.5, dim=4)
    out4 = jax.block_until_ready(layer4(x4))
    ref4 = x4 * layer4.scale[None, :, None, None]
    assert out4.dtype == ref4.dtype and jnp.allclose(out4, ref4, atol=1e-6), "dim=4 mismatch"

    # Force the split-D / partial-edge-block path with a tiny byte budget.
    out4_split = jax.block_until_ready(
        scale_layer_dim4(x4, layer4.scale, target_bytes=8192))
    assert jnp.allclose(out4_split, ref4, atol=1e-6), "dim=4 split-D mismatch"

    # Non-128-multiple spatial size (7x7): exercises full-width non-aligned rows.
    x4b = jax.random.normal(k3, (2, 4, 7, 7), dtype=jnp.float32)
    out4b = jax.block_until_ready(scale_layer_dim4(x4b, layer4.scale))
    ref4b = x4b * layer4.scale[None, :, None, None]
    assert jnp.allclose(out4b, ref4b, atol=1e-6), "dim=4 (7x7) mismatch"

    # bf16 input: output promotes to f32 (matches torch bf16 * f32 promotion).
    x4c = jax.random.normal(k4, (2, 4, 16, 16), dtype=jnp.bfloat16)
    out4c = jax.block_until_ready(scale_layer_dim4(x4c, layer4.scale))
    ref4c = x4c.astype(jnp.float32) * layer4.scale[None, :, None, None]
    assert out4c.dtype == jnp.float32, "dim=4 bf16 promotion mismatch"
    assert jnp.allclose(out4c, ref4c, atol=1e-6), "dim=4 bf16 mismatch"

    # --- dim=2: (N, C) input -------------------------------------------------
    x2 = jax.random.normal(k2, (8, 32), dtype=jnp.float32)
    layer2 = ScaleLayer(size=32, init_value=2.0, dim=2)
    out2 = jax.block_until_ready(layer2(x2))
    ref2 = x2 * layer2.scale[None, :]
    assert jnp.allclose(out2, ref2, atol=1e-6), "dim=2 mismatch"

    # dim=2 case where the lane-dense repack is not applicable (N % k != 0).
    x2b = jax.random.normal(k2, (7, 32), dtype=jnp.float32)
    out2b = jax.block_until_ready(scale_layer_dim2(x2b, layer2.scale))
    ref2b = x2b * layer2.scale[None, :]
    assert jnp.allclose(out2b, ref2b, atol=1e-6), "dim=2 (no repack) mismatch"

    print("KERNEL_OK")
</pallas_src>

<mosaic_0001>
module attributes {stable_mosaic.version = 11 : i64} {
  func.func @_row_scale_kernel(%arg0: i32, %arg1: i32, %arg2: memref<1x1024xf32, #tpu.memory_space<vmem>>, %arg3: memref<2x1024xf32, #tpu.memory_space<vmem>>, %arg4: memref<2x1024xf32, #tpu.memory_space<vmem>>) attributes {dimension_semantics = [#tpu.dimension_semantics<parallel>, #tpu.dimension_semantics<parallel>], iteration_bounds = array<i64: 1, 1>, scalar_prefetch = 0 : i64, scratch_operands = 0 : i64, tpu.core_type = #tpu.core_type<tc>, window_params = [{transform_indices = @transform_0, window_bounds = array<i64: 1, 1024>}, {transform_indices = @transform_1, window_bounds = array<i64: 2, 1024>}, {transform_indices = @transform_2, window_bounds = array<i64: 2, 1024>}]} {
    %c0 = arith.constant 0 : index
    %c0_0 = arith.constant 0 : index
    %0 = vector.load %arg3[%c0, %c0_0] : memref<2x1024xf32, #tpu.memory_space<vmem>>, vector<2x1024xf32>
    %c0_1 = arith.constant 0 : index
    %c0_2 = arith.constant 0 : index
    %1 = vector.load %arg2[%c0_1, %c0_2] : memref<1x1024xf32, #tpu.memory_space<vmem>>, vector<1x1024xf32>
    %2 = vector.broadcast %1 : vector<1x1024xf32> to vector<2x1024xf32>
    %3 = arith.mulf %0, %2 : vector<2x1024xf32>
    %c0_3 = arith.constant 0 : index
    %c0_4 = arith.constant 0 : index
    %4 = vector.load %arg4[%c0_3, %c0_4] : memref<2x1024xf32, #tpu.memory_space<vmem>>, vector<2x1024xf32>
    tpu.vector_store %arg4[%c0_3, %c0_4], %3 {strides = array<i32>} : memref<2x1024xf32, #tpu.memory_space<vmem>>, vector<2x1024xf32>,
    return
  }
  func.func @transform_0(%arg0: i32, %arg1: i32) -> (i32, i32) {
    %c0_i32 = arith.constant 0 : i32
    %c0_i32_0 = arith.constant 0 : i32
    return %c0_i32, %arg1 : i32, i32
  }
  func.func @transform_1(%arg0: i32, %arg1: i32) -> (i32, i32) {
    %c0_i32 = arith.constant 0 : i32
    return %arg0, %arg1 : i32, i32
  }
  func.func @transform_2(%arg0: i32, %arg1: i32) -> (i32, i32) {
    %c0_i32 = arith.constant 0 : i32
    return %arg0, %arg1 : i32, i32
  }
}

</mosaic_0001>

<bundles_post_ra>
// kernel: tpu_custom_call.1
= control target key start
LH: loop header
LB: loop body
LE: loop exit
PB: predicated region body
PF: predicated region fallthrough
CT: control target
= control target key end

     0   :  { %7 = vsyncpa [#allocation3], 0  ;;  %s259_s0 = inlined_call_operand.hbm [shape: f32[1,1024], index: 0, kind: input, shape index: {}]   ;;  %s260_s1 = inlined_call_operand.hbm [shape: f32[2,1024], index: 1, kind: input, shape index: {}]   ;;  %s261_s2 = inlined_call_operand.hbm [shape: f32[2,1024], index: 2, kind: output, shape index: {}]  }
   0x1   :  { %8 = vsyncpa [#allocation6], 0 }
   0x2   :  { %9 = vsyncpa [#allocation4], 0  ;;  %s204_s9 = smov [#allocation2]   ;;  %s205_s11 = smov [#allocation5]  }
   0x3   :  { %s16_s10 = sshll.u32 %s204_s9, 4  ;;  %s26_s12 = sshll.u32 %s205_s11, 4  ;;  %s17_s10 = int_to_ptr.vmem [resolvable:$true] %s16_s10  ;;  %s27_s12 = int_to_ptr.vmem [resolvable:$true] %s26_s12 }
   0x4   :  { %s132_s15 = scalar_lea.hbm %s259_s0, 128 }
   0x5   :  { %p133_p0 = scmp.ne.s32.totalorder %s259_s0, %s132_s15  ;;  %p136_p1 = scmp.lt.u32.totalorder %s132_s15, %s259_s0 }
   0x7   :  { %p138_p2 = pnand %p136_p1, %p133_p0 }
   0x9   :  { %141 = shalt.err (!%p138_p2)
}
   0xa   :  { %s142_s20 = scalar_lea.vmem %s17_s10, 128  ;;  %p147_p4 = scmp.lt.s32.totalorder %s17_s10, %s17_s10 }
   0xb   :  { %p143_p3 = scmp.ne.s32.totalorder %s17_s10, %s142_s20  ;;  %p148_p5 = scmp.lt.s32.totalorder %s142_s20, %s142_s20 }
   0xd   :  { %p149_p6 = por %p148_p5, %p147_p4 }
   0xf   :  { %p150_p7 = pnand %p149_p6, %p143_p3 }
  0x11   :  { %153 = shalt.err (!%p150_p7)
}
  0x12   :  { %19 = dma.hbm_to_vmem [thread:$0]  %s259_s0, 128, %s17_s10, [#allocation3]  }
  0x13   :  { %s154_s25 = scalar_lea.hbm %s260_s1, 256 }
  0x14   :  { %p155_p8 = scmp.ne.s32.totalorder %s260_s1, %s154_s25  ;;  %p158_p9 = scmp.lt.u32.totalorder %s154_s25, %s260_s1 }
  0x16   :  { %p160_p10 = pnand %p158_p9, %p155_p8 }
  0x18   :  { %163 = shalt.err (!%p160_p10)
}
  0x19   :  { %s164_s30 = scalar_lea.vmem %s27_s12, 256  ;;  %p169_p12 = scmp.lt.s32.totalorder %s27_s12, %s27_s12 }
  0x1a   :  { %p165_p11 = scmp.ne.s32.totalorder %s27_s12, %s164_s30  ;;  %p170_p13 = scmp.lt.s32.totalorder %s164_s30, %s164_s30 }
  0x1c   :  { %p171_p0 = por %p170_p13, %p169_p12 }
  0x1e   :  { %p172_p1 = pnand %p171_p0, %p165_p11 }
  0x20   :  { %175 = shalt.err (!%p172_p1)
}
  0x21   :  { %29 = dma.hbm_to_vmem [thread:$0]  %s260_s1, 256, %s27_s12, [#allocation6]  }
  0x22   :  { %198 = dma.done.wait [#allocation3], 128  }
  0x23   :  { %199 = vsyncadd [#allocation3], 4294967168 }
  0x24   :  { %200 = dma.done.wait [#allocation6], 256  }
  0x25   :  { %201 = vsyncadd [#allocation6], 4294967040  ;;  %v40_v0 = vlaneseq  ;;  %v206_v1 = vmov 1983009808   ;;  %v38_v13 = vld [vmem:[#allocation2] sm:$0xff]  ;;  %v36_v29 = vld [vmem:[#allocation5] sm:$0xff] }
  0x26   :  { %v75_v2 = vunpack.c.l.s4 %v206_v1  ;;  %v37_v33 = vld [vmem:[#allocation5 + $0x8] sm:$0xff]  ;;  %s207_s1 = smov [#allocation7]  }
  0x27   :  { %v41_v3 = vshrl.u32 %v40_v0, 7  ;;  %s118_s4 = sshll.u32 %s207_s1, 4  ;;  %s119_s4 = int_to_ptr.vmem [resolvable:$true] %s118_s4 }
  0x28   :  { %v76_v4 = vunpack.c.0.s8 %v75_v2  ;;  %s176_s5 = scalar_lea.vmem %s119_s4, 256  ;;  %p181_p3 = scmp.lt.s32.totalorder %s119_s4, %s119_s4 }
  0x29   :  { %v42_v5 = vsub.s32 0, %v41_v3  ;;  %v46_v6 = vsub.s32 1, %v41_v3  ;;  %v50_v7 = vsub.s32 2, %v41_v3  ;;  %v54_v8 = vsub.s32 3, %v41_v3  ;;  %p177_p2 = scmp.ne.s32.totalorder %s119_s4, %s176_s5  ;;  %p182_p4 = scmp.lt.s32.totalorder %s176_s5, %s176_s5 }
  0x2a   :  { %v58_v9 = vsub.s32 4, %v41_v3  ;;  %v62_v10 = vsub.s32 5, %v41_v3  ;;  %v66_v11 = vsub.s32 6, %v41_v3  ;;  %v70_v12 = vsub.s32 7, %v41_v3 }
  0x2b   :  { %v79_v14 = vsub.s32 %v76_v4, %v41_v3  ;;  %v43_v15 = vrot.slane %v38_v13, %v42_v5  ;;  %v47_v16 = vrot.slane %v38_v13, %v46_v6  ;;  %v51_v17 = vrot.slane %v38_v13, %v50_v7  ;;  %p183_p5 = por %p182_p4, %p181_p3 }
  0x2c   :  { %v55_v18 = vrot.slane %v38_v13, %v54_v8  ;;  %v59_v19 = vrot.slane %v38_v13, %v58_v9  ;;  %v63_v20 = vrot.slane %v38_v13, %v62_v10  ;;  %v67_v21 = vrot.slane %v38_v13, %v66_v11 }
  0x2d   :  { %v71_v22 = vrot.slane %v38_v13, %v70_v12  ;;  %v72_v23 = vcombine.low %v43_v15, %v47_v16  ;;  %p184_p6 = pnand %p183_p5, %p177_p2 }
  0x2e   :  { %v73_v24 = vcombine.low %v51_v17, %v55_v18  ;;  %v89_v25 = vcombine.low %v59_v19, %v63_v20 }
  0x2f   :  { %v90_v26 = vcombine.low %v67_v21, %v71_v22  ;;  %v80_v27 = vrot.slane %v72_v23, %v79_v14 }
  0x30   :  { %v87_v28 = vrot.slane %v73_v24, %v79_v14  ;;  %v97_v30 = vrot.slane %v89_v25, %v79_v14 }
  0x31   :  { %v104_v31 = vrot.slane %v90_v26, %v79_v14 }
  0x32   :  { %v88_v32 = vcombine.low %v80_v27, %v87_v28 }
  0x33   :  { %v105_v34 = vcombine.low %v97_v30, %v104_v31 }
  0x34   :  { %v108_v35 = vmul.f32 %v88_v32, %v36_v29 }
  0x35   :  { %v109_v36 = vmul.f32 %v105_v34, %v37_v33 }
  0x36   :  { %110 = vst [vmem:[#allocation7] sm:$0xff] %v108_v35 }
  0x37   :  { %111 = vst [vmem:[#allocation7 + $0x8] sm:$0xff] %v109_v36 }
  0x38   :  { %187 = shalt.err (!%p184_p6)
}
  0x39   :  { %s188_s8 = scalar_lea.hbm %s261_s2, 256 }
  0x3a   :  { %p189_p7 = scmp.ne.s32.totalorder %s261_s2, %s188_s8  ;;  %p192_p8 = scmp.lt.u32.totalorder %s188_s8, %s261_s2 }
  0x3c   :  { %p194_p9 = pnand %p192_p8, %p189_p7 }
  0x3e   :  { %197 = shalt.err (!%p194_p9)
}
  0x3f   :  { %121 = dma.vmem_to_hbm [thread:$0]  %s119_s4, 256, %s261_s2, [#allocation4]  }
  0x40   :  { %202 = dma.done.wait [#allocation4], 256  }
  0x41   :  { %203 = vsyncadd [#allocation4], 4294967040 }
  0x42   :  { %125 = vsyncpa [#allocation3], 1 }
  0x43   :  { %126 = vsyncpa [#allocation6], 1 }
  0x44   :  { %127 = vsyncpa [#allocation4], 1 }

</bundles_post_ra>
